<compile_context>
chip_gen: v7x
topology: tpu7x:2x2x1
jax: 0.10.0
libtpu: 0.0.40
codegen_flags: <defaults>
</compile_context>

<pallas_src>
import jax
import jax.numpy as jnp
from jax.experimental import pallas as pl
from jax.experimental.pallas import tpu as pltpu


_ROWS_PER_STEP = 8  # sublane-dense output block; >=8 rows amortizes ~0.35us/step


def _gather_rows_kernel(eff_ref, table_hbm, out_ref, row_buf, sems):
    """Gather _ROWS_PER_STEP embedding rows in one grid step.

    eff_ref:   (B_pad,) int32 in SMEM (scalar prefetch).
    table_hbm: (V, H_pad) embedding table left in HBM (memory_space=pl.ANY).
    out_ref:   (R, H_pad) output block in VMEM.
    row_buf:   (R, H_pad) VMEM scratch the row DMAs land in.
    sems:      (R,) DMA semaphores, one per in-flight row copy.
    """
    base = pl.program_id(0) * _ROWS_PER_STEP

    def row_copy(r):
        idx = eff_ref[base + r]
        return pltpu.make_async_copy(
            table_hbm.at[pl.ds(idx, 1), :],
            row_buf.at[pl.ds(r, 1), :],
            sems.at[r],
        )

    # Issue all R row DMAs first so the latency-bound ~KB copies overlap,
    # then wait for all of them.
    for r in range(_ROWS_PER_STEP):
        row_copy(r).start()
    for r in range(_ROWS_PER_STEP):
        row_copy(r).wait()

    # Single sublane/lane-dense (R, H_pad) store to the output block.
    out_ref[...] = row_buf[...]


def label_embedder_forward(
    labels,
    embedding_table,
    *,
    num_classes,
    dropout_prob,
    train,
    rng_key=None,
    force_drop_ids=None,
):
    """JAX/Pallas equivalent of LabelEmbedder.forward."""
    B = labels.shape[0]
    V, H = embedding_table.shape

    labels = labels.astype(jnp.int32)
    use_dropout = dropout_prob > 0

    # token_drop: cheap scalar work, done in the wrapper.
    if (train and use_dropout) or (force_drop_ids is not None):
        if force_drop_ids is None:
            if rng_key is None:
                raise ValueError(
                    "rng_key is required when train=True and dropout_prob > 0"
                )
            drop_ids = jax.random.uniform(rng_key, (B,)) < dropout_prob
        else:
            drop_ids = force_drop_ids == 1
        labels = jnp.where(drop_ids, num_classes, labels)

    # Pallas does not bounds-check the manual row DMAs; clamp defensively.
    # TODO(synk): PyTorch nn.Embedding raises on out-of-range ids; this clamp
    # silently remaps invalid ids to row V-1 instead (valid ids unaffected).
    eff_labels = jnp.clip(labels, 0, V - 1).astype(jnp.int32)

    R = _ROWS_PER_STEP
    B_pad = ((B + R - 1) // R) * R
    H_pad = ((H + 127) // 128) * 128

    if B_pad != B:
        eff_labels = jnp.pad(eff_labels, (0, B_pad - B))  # pads with row 0

    table = embedding_table
    if H_pad != H:
        # Lane-dense (multiple-of-128) rows -> unmasked vector stores.
        # For real DiT sizes (H = 1152 = 9*128) this branch is a no-op.
        table = jnp.pad(embedding_table, ((0, 0), (0, H_pad - H)))

    itemsize = jnp.dtype(table.dtype).itemsize
    cost = pl.CostEstimate(
        flops=0,
        transcendentals=0,
        # B_pad gathered rows in + B_pad rows out + B_pad int32 labels.
        bytes_accessed=int(2 * B_pad * H_pad * itemsize + B_pad * 4),
    )

    out = pl.pallas_call(
        _gather_rows_kernel,
        out_shape=jax.ShapeDtypeStruct((B_pad, H_pad), table.dtype),
        grid_spec=pltpu.PrefetchScalarGridSpec(
            num_scalar_prefetch=1,                # eff_labels -> SMEM
            grid=(B_pad // R,),                   # R rows gathered per step
            in_specs=[
                pl.BlockSpec(memory_space=pl.ANY),  # table stays in HBM
            ],
            out_specs=pl.BlockSpec((R, H_pad), lambda i, eff: (i, 0)),
            scratch_shapes=[
                pltpu.VMEM((R, H_pad), table.dtype),
                pltpu.SemaphoreType.DMA((R,)),
            ],
        ),
        compiler_params=pltpu.CompilerParams(
            # Row blocks are independent -> shard across TensorCores (v7x).
            dimension_semantics=("parallel",),
        ),
        cost_estimate=cost,
    )(eff_labels, table)

    if B_pad != B or H_pad != H:
        out = out[:B, :H]
    return out


if __name__ == "__main__":
    # Small, deterministic setup consistent with LabelEmbedder(__init__):
    # num_classes=10, hidden_size=32, dropout_prob=0.1 -> table has 11 rows.
    num_classes = 10
    hidden_size = 32
    dropout_prob = 0.1
    batch = 8

    key = jax.random.PRNGKey(0)
    k_table, k_labels, k_drop = jax.random.split(key, 3)

    embedding_table = 0.02 * jax.random.normal(
        k_table, (num_classes + 1, hidden_size), dtype=jnp.float32
    )
    labels = jax.random.randint(k_labels, (batch,), 0, num_classes, dtype=jnp.int32)

    out = label_embedder_forward(
        labels,
        embedding_table,
        num_classes=num_classes,
        dropout_prob=dropout_prob,
        train=True,
        rng_key=k_drop,
    )
    out = jax.block_until_ready(out)

    # Reference check (pure JAX) with the same deterministic drop ids.
    drop_ids = jax.random.uniform(k_drop, (batch,)) < dropout_prob
    eff = jnp.where(drop_ids, num_classes, labels)
    ref = embedding_table[eff]
    assert out.shape == (batch, hidden_size)
    assert jnp.allclose(out, ref, atol=1e-6), "mismatch vs reference gather"

    # Also check the eval path (no dropout applied).
    out_eval = jax.block_until_ready(
        label_embedder_forward(
            labels,
            embedding_table,
            num_classes=num_classes,
            dropout_prob=dropout_prob,
            train=False,
        )
    )
    assert jnp.allclose(out_eval, embedding_table[labels], atol=1e-6)

    print("KERNEL_OK")
</pallas_src>

<mosaic_0001>
module attributes {stable_mosaic.version = 11 : i64} {
  func.func @_gather_rows_kernel(%arg0: i32, %arg1: memref<8xi32, #tpu.memory_space<smem>>, %arg2: memref<11x128xf32, #tpu.memory_space<any>>, %arg3: memref<8x128xf32, #tpu.memory_space<vmem>>, %arg4: memref<8x128xf32, #tpu.memory_space<vmem>>, %arg5: memref<8x!tpu.dma_semaphore, #tpu.memory_space<semaphore_mem>>) attributes {dimension_semantics = [#tpu.dimension_semantics<parallel>], iteration_bounds = array<i64: 1>, scalar_prefetch = 1 : i64, scratch_operands = 2 : i64, tpu.core_type = #tpu.core_type<tc>, window_params = [{}, {transform_indices = @transform_1, window_bounds = array<i64: 8, 128>}]} {
    %c8_i32 = arith.constant 8 : i32
    %0 = arith.muli %arg0, %c8_i32 : i32
    %c0_i32 = arith.constant 0 : i32
    %1 = arith.addi %0, %c0_i32 : i32
    %2 = arith.index_cast %1 : i32 to index
    %3 = memref.load %arg1[%2] : memref<8xi32, #tpu.memory_space<smem>>
    %c0_i32_0 = arith.constant 0 : i32
    %c0_i32_1 = arith.constant 0 : i32
    %4 = tpu.memref_slice %arg2[%3, %c0_i32_1] : memref<11x128xf32, #tpu.memory_space<any>> -> memref<1x128xf32, #tpu.memory_space<any>>
    %c0_i32_2 = arith.constant 0 : i32
    %c0_i32_3 = arith.constant 0 : i32
    %5 = tpu.memref_slice %arg4[%c0_i32_2, %c0_i32_3] : memref<8x128xf32, #tpu.memory_space<vmem>> -> memref<1x128xf32, #tpu.memory_space<vmem>>
    %6 = tpu.memref_slice %arg5[%c0_i32_0] : memref<8x!tpu.dma_semaphore, #tpu.memory_space<semaphore_mem>> -> memref<1x!tpu.dma_semaphore, #tpu.memory_space<semaphore_mem>>
    %7 = tpu.memref_squeeze %6 : memref<1x!tpu.dma_semaphore, #tpu.memory_space<semaphore_mem>> -> memref<!tpu.dma_semaphore, #tpu.memory_space<semaphore_mem>>
    tpu.enqueue_dma source(%4 : memref<1x128xf32, #tpu.memory_space<any>>) target(%5 : memref<1x128xf32, #tpu.memory_space<vmem>>) target_semaphore(%7 : memref<!tpu.dma_semaphore, #tpu.memory_space<semaphore_mem>>)
    %c1_i32 = arith.constant 1 : i32
    %8 = arith.addi %0, %c1_i32 : i32
    %9 = arith.index_cast %8 : i32 to index
    %10 = memref.load %arg1[%9] : memref<8xi32, #tpu.memory_space<smem>>
    %c1_i32_4 = arith.constant 1 : i32
    %c0_i32_5 = arith.constant 0 : i32
    %11 = tpu.memref_slice %arg2[%10, %c0_i32_5] : memref<11x128xf32, #tpu.memory_space<any>> -> memref<1x128xf32, #tpu.memory_space<any>>
    %c1_i32_6 = arith.constant 1 : i32
    %c0_i32_7 = arith.constant 0 : i32
    %12 = tpu.memref_slice %arg4[%c1_i32_6, %c0_i32_7] : memref<8x128xf32, #tpu.memory_space<vmem>> -> memref<1x128xf32, #tpu.memory_space<vmem>>
    %13 = tpu.memref_slice %arg5[%c1_i32_4] : memref<8x!tpu.dma_semaphore, #tpu.memory_space<semaphore_mem>> -> memref<1x!tpu.dma_semaphore, #tpu.memory_space<semaphore_mem>>
    %14 = tpu.memref_squeeze %13 : memref<1x!tpu.dma_semaphore, #tpu.memory_space<semaphore_mem>> -> memref<!tpu.dma_semaphore, #tpu.memory_space<semaphore_mem>>
    tpu.enqueue_dma source(%11 : memref<1x128xf32, #tpu.memory_space<any>>) target(%12 : memref<1x128xf32, #tpu.memory_space<vmem>>) target_semaphore(%14 : memref<!tpu.dma_semaphore, #tpu.memory_space<semaphore_mem>>)
    %c2_i32 = arith.constant 2 : i32
    %15 = arith.addi %0, %c2_i32 : i32
    %16 = arith.index_cast %15 : i32 to index
    %17 = memref.load %arg1[%16] : memref<8xi32, #tpu.memory_space<smem>>
    %c2_i32_8 = arith.constant 2 : i32
    %c0_i32_9 = arith.constant 0 : i32
    %18 = tpu.memref_slice %arg2[%17, %c0_i32_9] : memref<11x128xf32, #tpu.memory_space<any>> -> memref<1x128xf32, #tpu.memory_space<any>>
    %c2_i32_10 = arith.constant 2 : i32
    %c0_i32_11 = arith.constant 0 : i32
    %19 = tpu.memref_slice %arg4[%c2_i32_10, %c0_i32_11] : memref<8x128xf32, #tpu.memory_space<vmem>> -> memref<1x128xf32, #tpu.memory_space<vmem>>
    %20 = tpu.memref_slice %arg5[%c2_i32_8] : memref<8x!tpu.dma_semaphore, #tpu.memory_space<semaphore_mem>> -> memref<1x!tpu.dma_semaphore, #tpu.memory_space<semaphore_mem>>
    %21 = tpu.memref_squeeze %20 : memref<1x!tpu.dma_semaphore, #tpu.memory_space<semaphore_mem>> -> memref<!tpu.dma_semaphore, #tpu.memory_space<semaphore_mem>>
    tpu.enqueue_dma source(%18 : memref<1x128xf32, #tpu.memory_space<any>>) target(%19 : memref<1x128xf32, #tpu.memory_space<vmem>>) target_semaphore(%21 : memref<!tpu.dma_semaphore, #tpu.memory_space<semaphore_mem>>)
    %c3_i32 = arith.constant 3 : i32
    %22 = arith.addi %0, %c3_i32 : i32
    %23 = arith.index_cast %22 : i32 to index
    %24 = memref.load %arg1[%23] : memref<8xi32, #tpu.memory_space<smem>>
    %c3_i32_12 = arith.constant 3 : i32
    %c0_i32_13 = arith.constant 0 : i32
    %25 = tpu.memref_slice %arg2[%24, %c0_i32_13] : memref<11x128xf32, #tpu.memory_space<any>> -> memref<1x128xf32, #tpu.memory_space<any>>
    %c3_i32_14 = arith.constant 3 : i32
    %c0_i32_15 = arith.constant 0 : i32
    %26 = tpu.memref_slice %arg4[%c3_i32_14, %c0_i32_15] : memref<8x128xf32, #tpu.memory_space<vmem>> -> memref<1x128xf32, #tpu.memory_space<vmem>>
    %27 = tpu.memref_slice %arg5[%c3_i32_12] : memref<8x!tpu.dma_semaphore, #tpu.memory_space<semaphore_mem>> -> memref<1x!tpu.dma_semaphore, #tpu.memory_space<semaphore_mem>>
    %28 = tpu.memref_squeeze %27 : memref<1x!tpu.dma_semaphore, #tpu.memory_space<semaphore_mem>> -> memref<!tpu.dma_semaphore, #tpu.memory_space<semaphore_mem>>
    tpu.enqueue_dma source(%25 : memref<1x128xf32, #tpu.memory_space<any>>) target(%26 : memref<1x128xf32, #tpu.memory_space<vmem>>) target_semaphore(%28 : memref<!tpu.dma_semaphore, #tpu.memory_space<semaphore_mem>>)
    %c4_i32 = arith.constant 4 : i32
    %29 = arith.addi %0, %c4_i32 : i32
    %30 = arith.index_cast %29 : i32 to index
    %31 = memref.load %arg1[%30] : memref<8xi32, #tpu.memory_space<smem>>
    %c4_i32_16 = arith.constant 4 : i32
    %c0_i32_17 = arith.constant 0 : i32
    %32 = tpu.memref_slice %arg2[%31, %c0_i32_17] : memref<11x128xf32, #tpu.memory_space<any>> -> memref<1x128xf32, #tpu.memory_space<any>>
    %c4_i32_18 = arith.constant 4 : i32
    %c0_i32_19 = arith.constant 0 : i32
    %33 = tpu.memref_slice %arg4[%c4_i32_18, %c0_i32_19] : memref<8x128xf32, #tpu.memory_space<vmem>> -> memref<1x128xf32, #tpu.memory_space<vmem>>
    %34 = tpu.memref_slice %arg5[%c4_i32_16] : memref<8x!tpu.dma_semaphore, #tpu.memory_space<semaphore_mem>> -> memref<1x!tpu.dma_semaphore, #tpu.memory_space<semaphore_mem>>
    %35 = tpu.memref_squeeze %34 : memref<1x!tpu.dma_semaphore, #tpu.memory_space<semaphore_mem>> -> memref<!tpu.dma_semaphore, #tpu.memory_space<semaphore_mem>>
    tpu.enqueue_dma source(%32 : memref<1x128xf32, #tpu.memory_space<any>>) target(%33 : memref<1x128xf32, #tpu.memory_space<vmem>>) target_semaphore(%35 : memref<!tpu.dma_semaphore, #tpu.memory_space<semaphore_mem>>)
    %c5_i32 = arith.constant 5 : i32
    %36 = arith.addi %0, %c5_i32 : i32
    %37 = arith.index_cast %36 : i32 to index
    %38 = memref.load %arg1[%37] : memref<8xi32, #tpu.memory_space<smem>>
    %c5_i32_20 = arith.constant 5 : i32
    %c0_i32_21 = arith.constant 0 : i32
    %39 = tpu.memref_slice %arg2[%38, %c0_i32_21] : memref<11x128xf32, #tpu.memory_space<any>> -> memref<1x128xf32, #tpu.memory_space<any>>
    %c5_i32_22 = arith.constant 5 : i32
    %c0_i32_23 = arith.constant 0 : i32
    %40 = tpu.memref_slice %arg4[%c5_i32_22, %c0_i32_23] : memref<8x128xf32, #tpu.memory_space<vmem>> -> memref<1x128xf32, #tpu.memory_space<vmem>>
    %41 = tpu.memref_slice %arg5[%c5_i32_20] : memref<8x!tpu.dma_semaphore, #tpu.memory_space<semaphore_mem>> -> memref<1x!tpu.dma_semaphore, #tpu.memory_space<semaphore_mem>>
    %42 = tpu.memref_squeeze %41 : memref<1x!tpu.dma_semaphore, #tpu.memory_space<semaphore_mem>> -> memref<!tpu.dma_semaphore, #tpu.memory_space<semaphore_mem>>
    tpu.enqueue_dma source(%39 : memref<1x128xf32, #tpu.memory_space<any>>) target(%40 : memref<1x128xf32, #tpu.memory_space<vmem>>) target_semaphore(%42 : memref<!tpu.dma_semaphore, #tpu.memory_space<semaphore_mem>>)
    %c6_i32 = arith.constant 6 : i32
    %43 = arith.addi %0, %c6_i32 : i32
    %44 = arith.index_cast %43 : i32 to index
    %45 = memref.load %arg1[%44] : memref<8xi32, #tpu.memory_space<smem>>
    %c6_i32_24 = arith.constant 6 : i32
    %c0_i32_25 = arith.constant 0 : i32
    %46 = tpu.memref_slice %arg2[%45, %c0_i32_25] : memref<11x128xf32, #tpu.memory_space<any>> -> memref<1x128xf32, #tpu.memory_space<any>>
    %c6_i32_26 = arith.constant 6 : i32
    %c0_i32_27 = arith.constant 0 : i32
    %47 = tpu.memref_slice %arg4[%c6_i32_26, %c0_i32_27] : memref<8x128xf32, #tpu.memory_space<vmem>> -> memref<1x128xf32, #tpu.memory_space<vmem>>
    %48 = tpu.memref_slice %arg5[%c6_i32_24] : memref<8x!tpu.dma_semaphore, #tpu.memory_space<semaphore_mem>> -> memref<1x!tpu.dma_semaphore, #tpu.memory_space<semaphore_mem>>
    %49 = tpu.memref_squeeze %48 : memref<1x!tpu.dma_semaphore, #tpu.memory_space<semaphore_mem>> -> memref<!tpu.dma_semaphore, #tpu.memory_space<semaphore_mem>>
    tpu.enqueue_dma source(%46 : memref<1x128xf32, #tpu.memory_space<any>>) target(%47 : memref<1x128xf32, #tpu.memory_space<vmem>>) target_semaphore(%49 : memref<!tpu.dma_semaphore, #tpu.memory_space<semaphore_mem>>)
    %c7_i32 = arith.constant 7 : i32
    %50 = arith.addi %0, %c7_i32 : i32
    %51 = arith.index_cast %50 : i32 to index
    %52 = memref.load %arg1[%51] : memref<8xi32, #tpu.memory_space<smem>>
    %c7_i32_28 = arith.constant 7 : i32
    %c0_i32_29 = arith.constant 0 : i32
    %53 = tpu.memref_slice %arg2[%52, %c0_i32_29] : memref<11x128xf32, #tpu.memory_space<any>> -> memref<1x128xf32, #tpu.memory_space<any>>
    %c7_i32_30 = arith.constant 7 : i32
    %c0_i32_31 = arith.constant 0 : i32
    %54 = tpu.memref_slice %arg4[%c7_i32_30, %c0_i32_31] : memref<8x128xf32, #tpu.memory_space<vmem>> -> memref<1x128xf32, #tpu.memory_space<vmem>>
    %55 = tpu.memref_slice %arg5[%c7_i32_28] : memref<8x!tpu.dma_semaphore, #tpu.memory_space<semaphore_mem>> -> memref<1x!tpu.dma_semaphore, #tpu.memory_space<semaphore_mem>>
    %56 = tpu.memref_squeeze %55 : memref<1x!tpu.dma_semaphore, #tpu.memory_space<semaphore_mem>> -> memref<!tpu.dma_semaphore, #tpu.memory_space<semaphore_mem>>
    tpu.enqueue_dma source(%53 : memref<1x128xf32, #tpu.memory_space<any>>) target(%54 : memref<1x128xf32, #tpu.memory_space<vmem>>) target_semaphore(%56 : memref<!tpu.dma_semaphore, #tpu.memory_space<semaphore_mem>>)
    %c0_i32_32 = arith.constant 0 : i32
    %57 = arith.addi %0, %c0_i32_32 : i32
    %58 = arith.index_cast %57 : i32 to index
    %59 = memref.load %arg1[%58] : memref<8xi32, #tpu.memory_space<smem>>
    %c0_i32_33 = arith.constant 0 : i32
    %c0_i32_34 = arith.constant 0 : i32
    %60 = tpu.memref_slice %arg2[%59, %c0_i32_34] : memref<11x128xf32, #tpu.memory_space<any>> -> memref<1x128xf32, #tpu.memory_space<any>>
    %c0_i32_35 = arith.constant 0 : i32
    %c0_i32_36 = arith.constant 0 : i32
    %61 = tpu.memref_slice %arg4[%c0_i32_35, %c0_i32_36] : memref<8x128xf32, #tpu.memory_space<vmem>> -> memref<1x128xf32, #tpu.memory_space<vmem>>
    %62 = tpu.memref_slice %arg5[%c0_i32_33] : memref<8x!tpu.dma_semaphore, #tpu.memory_space<semaphore_mem>> -> memref<1x!tpu.dma_semaphore, #tpu.memory_space<semaphore_mem>>
    %63 = tpu.memref_squeeze %62 : memref<1x!tpu.dma_semaphore, #tpu.memory_space<semaphore_mem>> -> memref<!tpu.dma_semaphore, #tpu.memory_space<semaphore_mem>>
    tpu.wait_dma2 semaphore(%63 : memref<!tpu.dma_semaphore, #tpu.memory_space<semaphore_mem>>) src(%60 : memref<1x128xf32, #tpu.memory_space<any>>) dst(%61 : memref<1x128xf32, #tpu.memory_space<vmem>>)
    %c1_i32_37 = arith.constant 1 : i32
    %64 = arith.addi %0, %c1_i32_37 : i32
    %65 = arith.index_cast %64 : i32 to index
    %66 = memref.load %arg1[%65] : memref<8xi32, #tpu.memory_space<smem>>
    %c1_i32_38 = arith.constant 1 : i32
    %c0_i32_39 = arith.constant 0 : i32
    %67 = tpu.memref_slice %arg2[%66, %c0_i32_39] : memref<11x128xf32, #tpu.memory_space<any>> -> memref<1x128xf32, #tpu.memory_space<any>>
    %c1_i32_40 = arith.constant 1 : i32
    %c0_i32_41 = arith.constant 0 : i32
    %68 = tpu.memref_slice %arg4[%c1_i32_40, %c0_i32_41] : memref<8x128xf32, #tpu.memory_space<vmem>> -> memref<1x128xf32, #tpu.memory_space<vmem>>
    %69 = tpu.memref_slice %arg5[%c1_i32_38] : memref<8x!tpu.dma_semaphore, #tpu.memory_space<semaphore_mem>> -> memref<1x!tpu.dma_semaphore, #tpu.memory_space<semaphore_mem>>
    %70 = tpu.memref_squeeze %69 : memref<1x!tpu.dma_semaphore, #tpu.memory_space<semaphore_mem>> -> memref<!tpu.dma_semaphore, #tpu.memory_space<semaphore_mem>>
    tpu.wait_dma2 semaphore(%70 : memref<!tpu.dma_semaphore, #tpu.memory_space<semaphore_mem>>) src(%67 : memref<1x128xf32, #tpu.memory_space<any>>) dst(%68 : memref<1x128xf32, #tpu.memory_space<vmem>>)
    %c2_i32_42 = arith.constant 2 : i32
    %71 = arith.addi %0, %c2_i32_42 : i32
    %72 = arith.index_cast %71 : i32 to index
    %73 = memref.load %arg1[%72] : memref<8xi32, #tpu.memory_space<smem>>
    %c2_i32_43 = arith.constant 2 : i32
    %c0_i32_44 = arith.constant 0 : i32
    %74 = tpu.memref_slice %arg2[%73, %c0_i32_44] : memref<11x128xf32, #tpu.memory_space<any>> -> memref<1x128xf32, #tpu.memory_space<any>>
    %c2_i32_45 = arith.constant 2 : i32
    %c0_i32_46 = arith.constant 0 : i32
    %75 = tpu.memref_slice %arg4[%c2_i32_45, %c0_i32_46] : memref<8x128xf32, #tpu.memory_space<vmem>> -> memref<1x128xf32, #tpu.memory_space<vmem>>
    %76 = tpu.memref_slice %arg5[%c2_i32_43] : memref<8x!tpu.dma_semaphore, #tpu.memory_space<semaphore_mem>> -> memref<1x!tpu.dma_semaphore, #tpu.memory_space<semaphore_mem>>
    %77 = tpu.memref_squeeze %76 : memref<1x!tpu.dma_semaphore, #tpu.memory_space<semaphore_mem>> -> memref<!tpu.dma_semaphore, #tpu.memory_space<semaphore_mem>>
    tpu.wait_dma2 semaphore(%77 : memref<!tpu.dma_semaphore, #tpu.memory_space<semaphore_mem>>) src(%74 : memref<1x128xf32, #tpu.memory_space<any>>) dst(%75 : memref<1x128xf32, #tpu.memory_space<vmem>>)
    %c3_i32_47 = arith.constant 3 : i32
    %78 = arith.addi %0, %c3_i32_47 : i32
    %79 = arith.index_cast %78 : i32 to index
    %80 = memref.load %arg1[%79] : memref<8xi32, #tpu.memory_space<smem>>
    %c3_i32_48 = arith.constant 3 : i32
    %c0_i32_49 = arith.constant 0 : i32
    %81 = tpu.memref_slice %arg2[%80, %c0_i32_49] : memref<11x128xf32, #tpu.memory_space<any>> -> memref<1x128xf32, #tpu.memory_space<any>>
    %c3_i32_50 = arith.constant 3 : i32
    %c0_i32_51 = arith.constant 0 : i32
    %82 = tpu.memref_slice %arg4[%c3_i32_50, %c0_i32_51] : memref<8x128xf32, #tpu.memory_space<vmem>> -> memref<1x128xf32, #tpu.memory_space<vmem>>
    %83 = tpu.memref_slice %arg5[%c3_i32_48] : memref<8x!tpu.dma_semaphore, #tpu.memory_space<semaphore_mem>> -> memref<1x!tpu.dma_semaphore, #tpu.memory_space<semaphore_mem>>
    %84 = tpu.memref_squeeze %83 : memref<1x!tpu.dma_semaphore, #tpu.memory_space<semaphore_mem>> -> memref<!tpu.dma_semaphore, #tpu.memory_space<semaphore_mem>>
    tpu.wait_dma2 semaphore(%84 : memref<!tpu.dma_semaphore, #tpu.memory_space<semaphore_mem>>) src(%81 : memref<1x128xf32, #tpu.memory_space<any>>) dst(%82 : memref<1x128xf32, #tpu.memory_space<vmem>>)
    %c4_i32_52 = arith.constant 4 : i32
    %85 = arith.addi %0, %c4_i32_52 : i32
    %86 = arith.index_cast %85 : i32 to index
    %87 = memref.load %arg1[%86] : memref<8xi32, #tpu.memory_space<smem>>
    %c4_i32_53 = arith.constant 4 : i32
    %c0_i32_54 = arith.constant 0 : i32
    %88 = tpu.memref_slice %arg2[%87, %c0_i32_54] : memref<11x128xf32, #tpu.memory_space<any>> -> memref<1x128xf32, #tpu.memory_space<any>>
    %c4_i32_55 = arith.constant 4 : i32
    %c0_i32_56 = arith.constant 0 : i32
    %89 = tpu.memref_slice %arg4[%c4_i32_55, %c0_i32_56] : memref<8x128xf32, #tpu.memory_space<vmem>> -> memref<1x128xf32, #tpu.memory_space<vmem>>
    %90 = tpu.memref_slice %arg5[%c4_i32_53] : memref<8x!tpu.dma_semaphore, #tpu.memory_space<semaphore_mem>> -> memref<1x!tpu.dma_semaphore, #tpu.memory_space<semaphore_mem>>
    %91 = tpu.memref_squeeze %90 : memref<1x!tpu.dma_semaphore, #tpu.memory_space<semaphore_mem>> -> memref<!tpu.dma_semaphore, #tpu.memory_space<semaphore_mem>>
    tpu.wait_dma2 semaphore(%91 : memref<!tpu.dma_semaphore, #tpu.memory_space<semaphore_mem>>) src(%88 : memref<1x128xf32, #tpu.memory_space<any>>) dst(%89 : memref<1x128xf32, #tpu.memory_space<vmem>>)
    %c5_i32_57 = arith.constant 5 : i32
    %92 = arith.addi %0, %c5_i32_57 : i32
    %93 = arith.index_cast %92 : i32 to index
    %94 = memref.load %arg1[%93] : memref<8xi32, #tpu.memory_space<smem>>
    %c5_i32_58 = arith.constant 5 : i32
    %c0_i32_59 = arith.constant 0 : i32
    %95 = tpu.memref_slice %arg2[%94, %c0_i32_59] : memref<11x128xf32, #tpu.memory_space<any>> -> memref<1x128xf32, #tpu.memory_space<any>>
    %c5_i32_60 = arith.constant 5 : i32
    %c0_i32_61 = arith.constant 0 : i32
    %96 = tpu.memref_slice %arg4[%c5_i32_60, %c0_i32_61] : memref<8x128xf32, #tpu.memory_space<vmem>> -> memref<1x128xf32, #tpu.memory_space<vmem>>
    %97 = tpu.memref_slice %arg5[%c5_i32_58] : memref<8x!tpu.dma_semaphore, #tpu.memory_space<semaphore_mem>> -> memref<1x!tpu.dma_semaphore, #tpu.memory_space<semaphore_mem>>
    %98 = tpu.memref_squeeze %97 : memref<1x!tpu.dma_semaphore, #tpu.memory_space<semaphore_mem>> -> memref<!tpu.dma_semaphore, #tpu.memory_space<semaphore_mem>>
    tpu.wait_dma2 semaphore(%98 : memref<!tpu.dma_semaphore, #tpu.memory_space<semaphore_mem>>) src(%95 : memref<1x128xf32, #tpu.memory_space<any>>) dst(%96 : memref<1x128xf32, #tpu.memory_space<vmem>>)
    %c6_i32_62 = arith.constant 6 : i32
    %99 = arith.addi %0, %c6_i32_62 : i32
    %100 = arith.index_cast %99 : i32 to index
    %101 = memref.load %arg1[%100] : memref<8xi32, #tpu.memory_space<smem>>
    %c6_i32_63 = arith.constant 6 : i32
    %c0_i32_64 = arith.constant 0 : i32
    %102 = tpu.memref_slice %arg2[%101, %c0_i32_64] : memref<11x128xf32, #tpu.memory_space<any>> -> memref<1x128xf32, #tpu.memory_space<any>>
    %c6_i32_65 = arith.constant 6 : i32
    %c0_i32_66 = arith.constant 0 : i32
    %103 = tpu.memref_slice %arg4[%c6_i32_65, %c0_i32_66] : memref<8x128xf32, #tpu.memory_space<vmem>> -> memref<1x128xf32, #tpu.memory_space<vmem>>
    %104 = tpu.memref_slice %arg5[%c6_i32_63] : memref<8x!tpu.dma_semaphore, #tpu.memory_space<semaphore_mem>> -> memref<1x!tpu.dma_semaphore, #tpu.memory_space<semaphore_mem>>
    %105 = tpu.memref_squeeze %104 : memref<1x!tpu.dma_semaphore, #tpu.memory_space<semaphore_mem>> -> memref<!tpu.dma_semaphore, #tpu.memory_space<semaphore_mem>>
    tpu.wait_dma2 semaphore(%105 : memref<!tpu.dma_semaphore, #tpu.memory_space<semaphore_mem>>) src(%102 : memref<1x128xf32, #tpu.memory_space<any>>) dst(%103 : memref<1x128xf32, #tpu.memory_space<vmem>>)
    %c7_i32_67 = arith.constant 7 : i32
    %106 = arith.addi %0, %c7_i32_67 : i32
    %107 = arith.index_cast %106 : i32 to index
    %108 = memref.load %arg1[%107] : memref<8xi32, #tpu.memory_space<smem>>
    %c7_i32_68 = arith.constant 7 : i32
    %c0_i32_69 = arith.constant 0 : i32
    %109 = tpu.memref_slice %arg2[%108, %c0_i32_69] : memref<11x128xf32, #tpu.memory_space<any>> -> memref<1x128xf32, #tpu.memory_space<any>>
    %c7_i32_70 = arith.constant 7 : i32
    %c0_i32_71 = arith.constant 0 : i32
    %110 = tpu.memref_slice %arg4[%c7_i32_70, %c0_i32_71] : memref<8x128xf32, #tpu.memory_space<vmem>> -> memref<1x128xf32, #tpu.memory_space<vmem>>
    %111 = tpu.memref_slice %arg5[%c7_i32_68] : memref<8x!tpu.dma_semaphore, #tpu.memory_space<semaphore_mem>> -> memref<1x!tpu.dma_semaphore, #tpu.memory_space<semaphore_mem>>
    %112 = tpu.memref_squeeze %111 : memref<1x!tpu.dma_semaphore, #tpu.memory_space<semaphore_mem>> -> memref<!tpu.dma_semaphore, #tpu.memory_space<semaphore_mem>>
    tpu.wait_dma2 semaphore(%112 : memref<!tpu.dma_semaphore, #tpu.memory_space<semaphore_mem>>) src(%109 : memref<1x128xf32, #tpu.memory_space<any>>) dst(%110 : memref<1x128xf32, #tpu.memory_space<vmem>>)
    %c0 = arith.constant 0 : index
    %c0_72 = arith.constant 0 : index
    %113 = vector.load %arg4[%c0, %c0_72] : memref<8x128xf32, #tpu.memory_space<vmem>>, vector<8x128xf32>
    %c0_73 = arith.constant 0 : index
    %c0_74 = arith.constant 0 : index
    %114 = vector.load %arg3[%c0_73, %c0_74] : memref<8x128xf32, #tpu.memory_space<vmem>>, vector<8x128xf32>
    tpu.vector_store %arg3[%c0_73, %c0_74], %113 {strides = array<i32>} : memref<8x128xf32, #tpu.memory_space<vmem>>, vector<8x128xf32>,
    return
  }
  func.func @transform_1(%arg0: i32, %arg1: memref<8xi32, #tpu.memory_space<smem>>) -> (i32, i32) {
    %c0_i32 = arith.constant 0 : i32
    %c0_i32_0 = arith.constant 0 : i32
    return %arg0, %c0_i32 : i32, i32
  }
}

</mosaic_0001>

<bundles_post_ra>
// kernel: tpu_custom_call.1
= control target key start
LH: loop header
LB: loop body
LE: loop exit
PB: predicated region body
PF: predicated region fallthrough
CT: control target
= control target key end

     0   :  { %s712_s0 = inlined_call_operand.hbm [shape: s32[8], index: 0, kind: input, shape index: {}]   ;;  %s713_s1 = inlined_call_operand.hbm [shape: f32[11,128], index: 1, kind: input, shape index: {}]   ;;  %s714_s2 = inlined_call_operand.hbm [shape: f32[8,128], index: 2, kind: output, shape index: {}]  }
   0x1   :  { %s291_s11 = scalar_lea.hbm %s712_s0, 16 }
   0x2   :  { %p292_p0 = scmp.ne.s32.totalorder %s712_s0, %s291_s11  ;;  %p295_p1 = scmp.lt.u32.totalorder %s291_s11, %s712_s0 }
   0x4   :  { %p297_p2 = pnand %p295_p1, %p292_p0 }
   0x6   :  { %300 = shalt.err (!%p297_p2)  }
   0x7   :  { %s535_s16 = smov [#allocation5]  }
   0x8   :  { %8 = dma.hbm_to_smem %s712_s0, 16, %s535_s16, [#allocation4] }
   0x9   :  { %515 = dma.done.wait [#allocation4], 16 }
   0xa   :  { %516 = vsyncadd [#allocation4], 4294967280 }
   0xb   :  { %10 = sfence }
   0xc   :  { %11 = vsyncpa [#allocation7], 0  ;;  %s13_s19 = sld [smem:[#allocation5]]  ;;  %s536_s20 = smov [#allocation2]  }
   0xd   :  { %s23_s21 = sshll.u32 %s536_s20, 4  ;;  %s572_s22 = sld [smem:[#allocation5 + $0x1]]  ;;  %s574_s21 = int_to_ptr.vmem [resolvable:$true] %s23_s21 }
   0xe   :  { %s537_s23 = smov [#allocation2 + $0x1]   ;;  %s576_s25 = sld [smem:[#allocation5 + $0x2]] }
   0xf   :  { %s40_s24 = sshll.u32 %s537_s23, 4  ;;  %s538_s26 = smov [#allocation2 + $0x2]   ;;  %s578_s24 = int_to_ptr.vmem [resolvable:$true] %s40_s24 }
  0x10   :  { %s57_s0 = sshll.u32 %s538_s26, 4  ;;  %s580_s27 = sld [smem:[#allocation5 + $0x3]]  ;;  %s582_s0 = int_to_ptr.vmem [resolvable:$true] %s57_s0 }
  0x11   :  { %s591_s8 = scalar_lea.hbm %s713_s1, 256 }
  0x12   :  { %s258_s28 = sshll.u32 %s13_s19, 4 }
  0x13   :  { %s15_s3 = scalar_lea.hbm %s713_s1, %s258_s28  ;;  %s260_s4 = sshll.u32 %s572_s22, 4 }
  0x14   :  { %s301_s5 = scalar_lea.hbm %s15_s3, 16  ;;  %p304_p4 = scmp.lt.u32.totalorder %s15_s3, %s713_s1 }
  0x15   :  { %p302_p3 = scmp.ne.s32.totalorder %s15_s3, %s301_s5  ;;  %p305_p5 = scmp.lt.u32.totalorder %s591_s8, %s301_s5 }
  0x16   :  { %p307_p7 = scmp.lt.u32.totalorder %s301_s5, %s15_s3 }
  0x17   :  { %p306_p6 = por %p305_p5, %p304_p4 }
  0x19   :  { %p308_p8 = por %p307_p7, %p306_p6 }
  0x1b   :  { %p309_p9 = pnand %p308_p8, %p302_p3 }
  0x1d   :  { %312 = shalt.err (!%p309_p9)  }
  0x1e   :  { %s313_s11 = scalar_lea.vmem %s574_s21, 16  ;;  %s600_s12 = scalar_lea.vmem %s574_s21, 128 }
  0x1f   :  { %p314_p10 = scmp.ne.s32.totalorder %s574_s21, %s313_s11  ;;  %p318_p11 = scmp.lt.s32.totalorder %s574_s21, %s574_s21 }
  0x20   :  { %p319_p12 = scmp.lt.s32.totalorder %s600_s12, %s313_s11 }
  0x22   :  { %p320_p13 = por %p319_p12, %p318_p11 }
  0x24   :  { %p321_p0 = pnand %p320_p13, %p314_p10 }
  0x26   :  { %324 = shalt.err (!%p321_p0)  }
  0x27   :  { %26 = dma.hbm_to_vmem [thread:$0]  %s15_s3, 16, %s574_s21, [#allocation3] }
  0x28   :  { %s30_s15 = scalar_lea.hbm %s713_s1, %s260_s4  ;;  %s262_s16 = sshll.u32 %s576_s25, 4 }
  0x29   :  { %s325_s17 = scalar_lea.hbm %s30_s15, 16  ;;  %p328_p2 = scmp.lt.u32.totalorder %s30_s15, %s713_s1 }
  0x2a   :  { %p326_p1 = scmp.ne.s32.totalorder %s30_s15, %s325_s17  ;;  %p329_p3 = scmp.lt.u32.totalorder %s591_s8, %s325_s17 }
  0x2b   :  { %p331_p5 = scmp.lt.u32.totalorder %s325_s17, %s30_s15 }
  0x2c   :  { %p330_p4 = por %p329_p3, %p328_p2 }
  0x2e   :  { %p332_p6 = por %p331_p5, %p330_p4 }
  0x30   :  { %p333_p7 = pnand %p332_p6, %p326_p1 }
  0x32   :  { %336 = shalt.err (!%p333_p7)  }
  0x33   :  { %s337_s20 = scalar_lea.vmem %s578_s24, 16  ;;  %p342_p9 = scmp.lt.s32.totalorder %s578_s24, %s574_s21 }
  0x34   :  { %p338_p8 = scmp.ne.s32.totalorder %s578_s24, %s337_s20  ;;  %p343_p10 = scmp.lt.s32.totalorder %s600_s12, %s337_s20 }
  0x36   :  { %p344_p11 = por %p343_p10, %p342_p9 }
  0x38   :  { %p345_p12 = pnand %p344_p11, %p338_p8 }
  0x3a   :  { %348 = shalt.err (!%p345_p12)  }
  0x3b   :  { %43 = dma.hbm_to_vmem [thread:$0]  %s30_s15, 16, %s578_s24, [#allocation3 + $0x1] }
  0x3c   :  { %s47_s25 = scalar_lea.hbm %s713_s1, %s262_s16  ;;  %s264_s26 = sshll.u32 %s580_s27, 4 }
  0x3d   :  { %s349_s28 = scalar_lea.hbm %s47_s25, 16  ;;  %p352_p0 = scmp.lt.u32.totalorder %s47_s25, %s713_s1 }
  0x3e   :  { %p350_p13 = scmp.ne.s32.totalorder %s47_s25, %s349_s28  ;;  %p353_p1 = scmp.lt.u32.totalorder %s591_s8, %s349_s28 }
  0x3f   :  { %p355_p3 = scmp.lt.u32.totalorder %s349_s28, %s47_s25 }
  0x40   :  { %p354_p2 = por %p353_p1, %p352_p0 }
  0x42   :  { %p356_p4 = por %p355_p3, %p354_p2 }
  0x44   :  { %p357_p5 = pnand %p356_p4, %p350_p13 }
  0x46   :  { %360 = shalt.err (!%p357_p5)  }
  0x47   :  { %s361_s24 = scalar_lea.vmem %s582_s0, 16  ;;  %p366_p7 = scmp.lt.s32.totalorder %s582_s0, %s574_s21 }
  0x48   :  { %p362_p6 = scmp.ne.s32.totalorder %s582_s0, %s361_s24  ;;  %p367_p8 = scmp.lt.s32.totalorder %s600_s12, %s361_s24 }
  0x4a   :  { %p368_p9 = por %p367_p8, %p366_p7 }
  0x4c   :  { %p369_p10 = pnand %p368_p9, %p362_p6 }
  0x4e   :  { %372 = shalt.err (!%p369_p10)  }
  0x4f   :  { %60 = dma.hbm_to_vmem [thread:$0]  %s47_s25, 16, %s582_s0, [#allocation3 + $0x2] }
  0x50   :  { %s64_s4 = scalar_lea.hbm %s713_s1, %s264_s26  ;;  %s539_s5 = smov [#allocation2 + $0x3]  }
  0x51   :  { %s74_s6 = sshll.u32 %s539_s5, 4  ;;  %s637_s7 = sld [smem:[#allocation5 + $0x4]]  ;;  %s75_s6 = int_to_ptr.vmem [resolvable:$true] %s74_s6 }
  0x52   :  { %s373_s9 = scalar_lea.hbm %s64_s4, 16  ;;  %p376_p12 = scmp.lt.u32.totalorder %s64_s4, %s713_s1 }
  0x53   :  { %p374_p11 = scmp.ne.s32.totalorder %s64_s4, %s373_s9  ;;  %p377_p13 = scmp.lt.u32.totalorder %s591_s8, %s373_s9 }
  0x54   :  { %p379_p1 = scmp.lt.u32.totalorder %s373_s9, %s64_s4 }
  0x55   :  { %p378_p0 = por %p377_p13, %p376_p12 }
  0x57   :  { %p380_p2 = por %p379_p1, %p378_p0 }
  0x59   :  { %p381_p3 = pnand %p380_p2, %p374_p11 }
  0x5b   :  { %384 = shalt.err (!%p381_p3)  }
  0x5c   :  { %s385_s0 = scalar_lea.vmem %s75_s6, 16  ;;  %p390_p5 = scmp.lt.s32.totalorder %s75_s6, %s574_s21 }
  0x5d   :  { %p386_p4 = scmp.ne.s32.totalorder %s75_s6, %s385_s0  ;;  %p391_p6 = scmp.lt.s32.totalorder %s600_s12, %s385_s0 }
  0x5f   :  { %p392_p7 = por %p391_p6, %p390_p5 }
  0x61   :  { %p393_p8 = pnand %p392_p7, %p386_p4 }
  0x63   :  { %396 = shalt.err (!%p393_p8)  }
  0x64   :  { %77 = dma.hbm_to_vmem [thread:$0]  %s64_s4, 16, %s75_s6, [#allocation3 + $0x3] }
  0x65   :  { %s540_s13 = smov [#allocation2 + $0x4]   ;;  %s645_s15 = sld [smem:[#allocation5 + $0x5]] }
  0x66   :  { %s91_s14 = sshll.u32 %s540_s13, 4  ;;  %s541_s16 = smov [#allocation2 + $0x5]   ;;  %s92_s14 = int_to_ptr.vmem [resolvable:$true] %s91_s14 }
  0x67   :  { %s108_s17 = sshll.u32 %s541_s16, 4  ;;  %s647_s18 = sld [smem:[#allocation5 + $0x6]]  ;;  %s650_s17 = int_to_ptr.vmem [resolvable:$true] %s108_s17 }
  0x68   :  { %s266_s19 = sshll.u32 %s637_s7, 4 }
  0x69   :  { %s81_s23 = scalar_lea.hbm %s713_s1, %s266_s19 }
  0x6a   :  { %s397_s25 = scalar_lea.hbm %s81_s23, 16  ;;  %p400_p10 = scmp.lt.u32.totalorder %s81_s23, %s713_s1 }
  0x6b   :  { %p398_p9 = scmp.ne.s32.totalorder %s81_s23, %s397_s25  ;;  %p401_p11 = scmp.lt.u32.totalorder %s591_s8, %s397_s25 }
  0x6c   :  { %p403_p13 = scmp.lt.u32.totalorder %s397_s25, %s81_s23 }
  0x6d   :  { %p402_p12 = por %p401_p11, %p400_p10 }
  0x6f   :  { %p404_p0 = por %p403_p13, %p402_p12 }
  0x71   :  { %p405_p1 = pnand %p404_p0, %p398_p9 }
  0x73   :  { %408 = shalt.err (!%p405_p1)  }
  0x74   :  { %s409_s29 = scalar_lea.vmem %s92_s14, 16  ;;  %p414_p3 = scmp.lt.s32.totalorder %s92_s14, %s574_s21 }
  0x75   :  { %p410_p2 = scmp.ne.s32.totalorder %s92_s14, %s409_s29  ;;  %p415_p4 = scmp.lt.s32.totalorder %s600_s12, %s409_s29 }
  0x77   :  { %p416_p5 = por %p415_p4, %p414_p3 }
  0x79   :  { %p417_p6 = pnand %p416_p5, %p410_p2 }
  0x7b   :  { %420 = shalt.err (!%p417_p6)  }
  0x7c   :  { %94 = dma.hbm_to_vmem [thread:$0]  %s81_s23, 16, %s92_s14, [#allocation3 + $0x4] }
  0x7d   :  { %s268_s30 = sshll.u32 %s645_s15, 4  ;;  %s542_s24 = smov [#allocation2 + $0x6]  }
  0x7e   :  { %s125_s27 = sshll.u32 %s542_s24, 4  ;;  %s98_s5 = scalar_lea.hbm %s713_s1, %s268_s30  ;;  %s665_s27 = int_to_ptr.vmem [resolvable:$true] %s125_s27 }
  0x7f   :  { %s421_s6 = scalar_lea.hbm %s98_s5, 16  ;;  %p424_p8 = scmp.lt.u32.totalorder %s98_s5, %s713_s1 }
  0x80   :  { %p422_p7 = scmp.ne.s32.totalorder %s98_s5, %s421_s6  ;;  %p425_p9 = scmp.lt.u32.totalorder %s591_s8, %s421_s6 }
  0x81   :  { %p427_p11 = scmp.lt.u32.totalorder %s421_s6, %s98_s5 }
  0x82   :  { %p426_p10 = por %p425_p9, %p424_p8 }
  0x84   :  { %p428_p12 = por %p427_p11, %p426_p10 }
  0x86   :  { %p429_p13 = pnand %p428_p12, %p422_p7 }
  0x88   :  { %432 = shalt.err (!%p429_p13)  }
  0x89   :  { %s433_s10 = scalar_lea.vmem %s650_s17, 16  ;;  %p438_p1 = scmp.lt.s32.totalorder %s650_s17, %s574_s21 }
  0x8a   :  { %p434_p0 = scmp.ne.s32.totalorder %s650_s17, %s433_s10  ;;  %p439_p2 = scmp.lt.s32.totalorder %s600_s12, %s433_s10 }
  0x8c   :  { %p440_p3 = por %p439_p2, %p438_p1 }
  0x8e   :  { %p441_p4 = pnand %p440_p3, %p434_p0 }
  0x90   :  { %444 = shalt.err (!%p441_p4)  }
  0x91   :  { %111 = dma.hbm_to_vmem [thread:$0]  %s98_s5, 16, %s650_s17, [#allocation3 + $0x5] }
  0x92   :  { %s270_s11 = sshll.u32 %s647_s18, 4  ;;  %s271_s0 = sld [smem:[#allocation5 + $0x7]] }
  0x93   :  { %s115_s15 = scalar_lea.hbm %s713_s1, %s270_s11 }
  0x94   :  { %s445_s16 = scalar_lea.hbm %s115_s15, 16  ;;  %p448_p6 = scmp.lt.u32.totalorder %s115_s15, %s713_s1 }
  0x95   :  { %p446_p5 = scmp.ne.s32.totalorder %s115_s15, %s445_s16  ;;  %p449_p7 = scmp.lt.u32.totalorder %s591_s8, %s445_s16 }
  0x96   :  { %p451_p9 = scmp.lt.u32.totalorder %s445_s16, %s115_s15 }
  0x97   :  { %p450_p8 = por %p449_p7, %p448_p6 }
  0x99   :  { %p452_p10 = por %p451_p9, %p450_p8 }
  0x9b   :  { %p453_p11 = pnand %p452_p10, %p446_p5 }
  0x9d   :  { %456 = shalt.err (!%p453_p11)  }
  0x9e   :  { %s457_s17 = scalar_lea.vmem %s665_s27, 16  ;;  %p462_p13 = scmp.lt.s32.totalorder %s665_s27, %s574_s21 }
  0x9f   :  { %p458_p12 = scmp.ne.s32.totalorder %s665_s27, %s457_s17  ;;  %p463_p0 = scmp.lt.s32.totalorder %s600_s12, %s457_s17 }
  0xa1   :  { %p464_p1 = por %p463_p0, %p462_p13 }
  0xa3   :  { %p465_p2 = pnand %p464_p1, %p458_p12 }
  0xa5   :  { %468 = shalt.err (!%p465_p2)  }
  0xa6   :  { %128 = dma.hbm_to_vmem [thread:$0]  %s115_s15, 16, %s665_s27, [#allocation3 + $0x6] }
  0xa7   :  { %s543_s18 = smov [#allocation2 + $0x7]   ;;  %s272_s23 = sshll.u32 %s271_s0, 4 }
  0xa8   :  { %s142_s22 = sshll.u32 %s543_s18, 4  ;;  %s132_s28 = scalar_lea.hbm %s713_s1, %s272_s23  ;;  %s143_s22 = int_to_ptr.vmem [resolvable:$true] %s142_s22 }
  0xa9   :  { %s469_s29 = scalar_lea.hbm %s132_s28, 16  ;;  %p472_p4 = scmp.lt.u32.totalorder %s132_s28, %s713_s1 }
  0xaa   :  { %p470_p3 = scmp.ne.s32.totalorder %s132_s28, %s469_s29  ;;  %p473_p5 = scmp.lt.u32.totalorder %s591_s8, %s469_s29 }
  0xab   :  { %p475_p7 = scmp.lt.u32.totalorder %s469_s29, %s132_s28 }
  0xac   :  { %p474_p6 = por %p473_p5, %p472_p4 }
  0xae   :  { %p476_p8 = por %p475_p7, %p474_p6 }
  0xb0   :  { %p477_p9 = pnand %p476_p8, %p470_p3 }
  0xb2   :  { %480 = shalt.err (!%p477_p9)  }
  0xb3   :  { %s481_s27 = scalar_lea.vmem %s143_s22, 16  ;;  %p486_p11 = scmp.lt.s32.totalorder %s143_s22, %s574_s21 }
  0xb4   :  { %p482_p10 = scmp.ne.s32.totalorder %s143_s22, %s481_s27  ;;  %p487_p12 = scmp.lt.s32.totalorder %s600_s12, %s481_s27 }
  0xb6   :  { %p488_p13 = por %p487_p12, %p486_p11 }
  0xb8   :  { %p489_p0 = pnand %p488_p13, %p482_p10 }
  0xba   :  { %492 = shalt.err (!%p489_p0)  }
  0xbb   :  { %145 = dma.hbm_to_vmem [thread:$0]  %s132_s28, 16, %s143_s22, [#allocation3 + $0x7] }
  0xbc   :  { %517 = dma.done.wait [#allocation3], 16 }
  0xbd   :  { %518 = vsyncadd [#allocation3], 4294967280 }
  0xbe   :  { %519 = dma.done.wait [#allocation3 + $0x1], 16 }
  0xbf   :  { %520 = vsyncadd [#allocation3 + $0x1], 4294967280 }
  0xc0   :  { %521 = dma.done.wait [#allocation3 + $0x2], 16 }
  0xc1   :  { %522 = vsyncadd [#allocation3 + $0x2], 4294967280 }
  0xc2   :  { %523 = dma.done.wait [#allocation3 + $0x3], 16 }
  0xc3   :  { %524 = vsyncadd [#allocation3 + $0x3], 4294967280 }
  0xc4   :  { %525 = dma.done.wait [#allocation3 + $0x4], 16 }
  0xc5   :  { %526 = vsyncadd [#allocation3 + $0x4], 4294967280 }
  0xc6   :  { %527 = dma.done.wait [#allocation3 + $0x5], 16 }
  0xc7   :  { %528 = vsyncadd [#allocation3 + $0x5], 4294967280 }
  0xc8   :  { %529 = dma.done.wait [#allocation3 + $0x6], 16 }
  0xc9   :  { %530 = vsyncadd [#allocation3 + $0x6], 4294967280 }
  0xca   :  { %531 = dma.done.wait [#allocation3 + $0x7], 16 }
  0xcb   :  { %532 = vsyncadd [#allocation3 + $0x7], 4294967280  ;;  %s544_s1 = smov [#allocation6]   ;;  %v171_v0 = vld [vmem:[#allocation2] sm:$0xff] }
  0xcc   :  { %s179_s21 = sshll.u32 %s544_s1, 4  ;;  %172 = vst [vmem:[#allocation6] sm:$0xff] %v171_v0  ;;  %s180_s21 = int_to_ptr.vmem [resolvable:$true] %s179_s21 }
  0xcd   :  { %s493_s8 = scalar_lea.vmem %s180_s21, 128  ;;  %p498_p2 = scmp.lt.s32.totalorder %s180_s21, %s180_s21 }
  0xce   :  { %p494_p1 = scmp.ne.s32.totalorder %s180_s21, %s493_s8  ;;  %p499_p3 = scmp.lt.s32.totalorder %s493_s8, %s493_s8 }
  0xd0   :  { %p500_p4 = por %p499_p3, %p498_p2 }
  0xd2   :  { %p501_p5 = pnand %p500_p4, %p494_p1 }
  0xd4   :  { %504 = shalt.err (!%p501_p5)
}
  0xd5   :  { %s505_s4 = scalar_lea.hbm %s714_s2, 128 }
  0xd6   :  { %p506_p6 = scmp.ne.s32.totalorder %s714_s2, %s505_s4  ;;  %p509_p7 = scmp.lt.u32.totalorder %s505_s4, %s714_s2 }
  0xd8   :  { %p511_p8 = pnand %p509_p7, %p506_p6 }
  0xda   :  { %514 = shalt.err (!%p511_p8)
}
  0xdb   :  { %182 = dma.vmem_to_hbm [thread:$0]  %s180_s21, 128, %s714_s2, [#allocation7]  }
  0xdc   :  { %533 = dma.done.wait [#allocation7], 128  }
  0xdd   :  { %534 = vsyncadd [#allocation7], 4294967168 }
  0xde   :  { %186 = vsyncpa [#allocation7], 1 }
  0xdf   :  { %187 = vsyncmov [#allocation3] }
  0xe2   :  { %s188_s0 = vpop.sfrf %187 }
  0xe3   :  { %p273_p9 = scmp.ne.s32.totalorder %s188_s0, 0 }
  0xe5   :  { %192 = shalt.err (%p273_p9)  }
  0xe6   :  { %194 = vsyncmov [#allocation3 + $0x1] }
  0xe9   :  { %s195_s13 = vpop.sfrf %194 }
  0xea   :  { %p274_p10 = scmp.ne.s32.totalorder %s195_s13, 0 }
  0xec   :  { %199 = shalt.err (%p274_p10)  }
  0xed   :  { %201 = vsyncmov [#allocation3 + $0x2] }
  0xf0   :  { %s202_s14 = vpop.sfrf %201 }
  0xf1   :  { %p275_p11 = scmp.ne.s32.totalorder %s202_s14, 0 }
  0xf3   :  { %206 = shalt.err (%p275_p11)  }
  0xf4   :  { %208 = vsyncmov [#allocation3 + $0x3] }
  0xf7   :  { %s209_s15 = vpop.sfrf %208 }
  0xf8   :  { %p276_p12 = scmp.ne.s32.totalorder %s209_s15, 0 }
  0xfa   :  { %213 = shalt.err (%p276_p12)  }
  0xfb   :  { %215 = vsyncmov [#allocation3 + $0x4] }
  0xfe   :  { %s216_s2 = vpop.sfrf %215 }
  0xff   :  { %p277_p13 = scmp.ne.s32.totalorder %s216_s2, 0 }
 0x101   :  { %220 = shalt.err (%p277_p13)  }
 0x102   :  { %222 = vsyncmov [#allocation3 + $0x5] }
 0x105   :  { %s223_s16 = vpop.sfrf %222 }
 0x106   :  { %p278_p0 = scmp.ne.s32.totalorder %s223_s16, 0 }
 0x108   :  { %227 = shalt.err (%p278_p0)  }
 0x109   :  { %229 = vsyncmov [#allocation3 + $0x6] }
 0x10c   :  { %s230_s19 = vpop.sfrf %229 }
 0x10d   :  { %p279_p1 = scmp.ne.s32.totalorder %s230_s19, 0 }
 0x10f   :  { %234 = shalt.err (%p279_p1)  }
 0x110   :  { %236 = vsyncmov [#allocation3 + $0x7] }
 0x113   :  { %s237_s20 = vpop.sfrf %236 }
 0x114   :  { %p280_p2 = scmp.ne.s32.totalorder %s237_s20, 0 }
 0x116   :  { %241 = shalt.err (%p280_p2)  }

</bundles_post_ra>
